<compile_context>
chip_gen: v7x
topology: tpu7x:2x2x1
jax: 0.10.0
libtpu: 0.0.40
codegen_flags: <defaults>
</compile_context>

<pallas_src>
import functools

import jax
import jax.numpy as jnp
from jax import lax
from jax.experimental import pallas as pl
from jax.experimental.pallas import tpu as pltpu

BN_EPS = 1e-5
MAX_TILE_N = 8192             # rows per grid step, upper bound
TARGET_BLOCK_BYTES = 2 << 20  # aim for >= 2 MiB per x-block DMA
FUSE_MAX_BYTES = 2 << 20      # single fused kernel when working set fits here


def _round_up(x, m):
    return (x + m - 1) // m * m


def _vmem_budget_bytes():
    """Generation-aware scoped-VMEM budget (~48 MiB on v7x, ~96 MiB on v5e/v6e)."""
    phys = 64 * 1024 * 1024
    try:
        phys = int(pltpu.get_tpu_info().vmem_capacity_bytes)
    except Exception:
        pass  # conservative 64 MiB assumption is safe on every generation
    return min(phys * 3 // 4, 100 * 1024 * 1024)


def _choose_tile_n(n_rows, c, s_pad, x_itemsize, out_itemsize, budget):
    """Pick a row tile: big enough to amortize per-step overhead, small enough
    that the double-buffered pass-2 working set fits the VMEM budget."""
    per_row = 2 * c * x_itemsize + 2 * s_pad * out_itemsize + 4 * s_pad  # x, out, f32 y
    fixed = 2 * c * s_pad * x_itemsize + 2 * s_pad * 4 + 2 * c * 4       # W, bias, scale
    avail = max(int(budget * 0.8) - fixed, per_row * 16)
    fit_rows = max(avail // per_row, 16)
    target_rows = max(TARGET_BLOCK_BYTES // (c * x_itemsize), 16)
    choice = min(fit_rows, target_rows, MAX_TILE_N)
    choice = max((choice // 16) * 16, 16)   # 16-aligned sublanes (f32 and bf16 safe)
    # Single full-extent block (legal even when n_rows is not 8/16-aligned).
    return n_rows if choice >= n_rows else choice


# ---------------- Fused kernel (small problems): stats + BN + matmul + ReLU ----------
def _fused_kernel(x_ref, gamma_ref, beta_ref, w_ref, b_ref, o_ref, *, n_rows):
    x = x_ref[...].astype(jnp.float32)
    inv_n = 1.0 / n_rows
    mean = jnp.sum(x, axis=0, keepdims=True) * inv_n
    var = jnp.maximum(jnp.sum(x * x, axis=0, keepdims=True) * inv_n - mean * mean, 0.0)
    inv_std = lax.rsqrt(var + BN_EPS)
    scale = gamma_ref[...] * inv_std
    shift = beta_ref[...] - mean * scale
    xn = (x * scale + shift).astype(x_ref.dtype)
    y = jnp.dot(xn, w_ref[...], preferred_element_type=jnp.float32) + b_ref[...]
    o_ref[...] = jnp.maximum(y, 0.0).astype(o_ref.dtype)


# ---------------- Pass 1: per-channel sum / sum-of-squares (f32 accumulate) ----------
def _stats_kernel(x_ref, sum_ref, ssq_ref, *, tile_n, inner, n_rows, mask_tail):
    @pl.when(pl.program_id(1) == 0)
    def _():
        sum_ref[...] = jnp.zeros_like(sum_ref)
        ssq_ref[...] = jnp.zeros_like(ssq_ref)

    x = x_ref[...].astype(jnp.float32)
    if mask_tail:
        # Last global block is partial: zero the out-of-range rows before reducing.
        row0 = (pl.program_id(0) * inner + pl.program_id(1)) * tile_n
        rows = lax.broadcasted_iota(jnp.int32, x.shape, 0)
        x = jnp.where(rows < (n_rows - row0), x, 0.0)
    sum_ref[...] += jnp.sum(x, axis=0, keepdims=True)[None]
    ssq_ref[...] += jnp.sum(x * x, axis=0, keepdims=True)[None]


# ---------------- Pass 2: tiled (x * scale) @ W + b' + ReLU -------------------------
def _mlp_kernel(x_ref, scale_ref, w_ref, b_ref, o_ref):
    # BN scale applied to the x tile on the VPU (hides under MXU/DMA); W untouched.
    xs = (x_ref[...].astype(jnp.float32) * scale_ref[...]).astype(x_ref.dtype)
    y = jnp.dot(xs, w_ref[...], preferred_element_type=jnp.float32) + b_ref[...]
    o_ref[...] = jnp.maximum(y, 0.0).astype(o_ref.dtype)


def emb_model_forward(emb, prop, params):
    """Pallas implementation of EmbModel.forward.

    emb: (B, L, C) or (B, C); prop is unused by the reference forward.
    """
    del prop
    gamma = params["bn_weight"].astype(jnp.float32)    # (1, C)
    beta = params["bn_bias"].astype(jnp.float32)       # (1, C)
    w = params["lin_weight_t"].astype(jnp.float32)     # (C, S)
    b = params["lin_bias"].astype(jnp.float32)         # (1, S)

    was_3d = emb.ndim == 3
    if was_3d:
        B, L, C = emb.shape
        x = emb.reshape(B * L, C)
    else:
        B, C = emb.shape
        x = emb
    N = x.shape[0]
    S = w.shape[1]
    x_itemsize = x.dtype.itemsize
    out_itemsize = jnp.dtype(emb.dtype).itemsize
    mm_dtype = x.dtype                       # bf16 inputs use bf16 MXU operands
    budget = _vmem_budget_bytes()

    # ---------------- Small problems: one fused kernel ----------------
    fused_bytes = (N * C * (x_itemsize + 4) + C * S * x_itemsize
                   + N * S * (4 + out_itemsize) + 6 * C * 4 + 2 * S * 4)
    if fused_bytes <= min(FUSE_MAX_BYTES, budget // 4):
        w_mm = w.astype(mm_dtype)
        out = pl.pallas_call(
            functools.partial(_fused_kernel, n_rows=N),
            out_shape=jax.ShapeDtypeStruct((N, S), emb.dtype),
        )(x, gamma, beta, w_mm, b)
        return out.reshape(B, L, S) if was_3d else out

    # ---------------- Large problems: two passes ----------------
    # Pad S to 128 lanes only when it pays for itself (lane-dense stores vs. extra
    # HBM write traffic + post-slice copy for narrow heads).
    s_pad = S if (S % 128 == 0 or S < 64) else _round_up(S, 128)

    tile_n = _choose_tile_n(N, C, s_pad, x_itemsize, out_itemsize, budget)
    grid_n = (N + tile_n - 1) // tile_n
    p_split = 2 if (grid_n >= 2 and grid_n % 2 == 0) else 1   # megacore split (v7x)
    inner = grid_n // p_split
    mask_tail = (N % tile_n) != 0

    # ---- Pass 1: channel statistics (partial sums per parallel slice) ----
    part_sum, part_ssq = pl.pallas_call(
        functools.partial(_stats_kernel, tile_n=tile_n, inner=inner,
                          n_rows=N, mask_tail=mask_tail),
        out_shape=(jax.ShapeDtypeStruct((p_split, 1, C), jnp.float32),
                   jax.ShapeDtypeStruct((p_split, 1, C), jnp.float32)),
        grid=(p_split, inner),
        in_specs=[pl.BlockSpec((tile_n, C), lambda p, i: (p * inner + i, 0))],
        out_specs=(pl.BlockSpec((1, 1, C), lambda p, i: (p, 0, 0)),
                   pl.BlockSpec((1, 1, C), lambda p, i: (p, 0, 0))),
        compiler_params=pltpu.CompilerParams(
            dimension_semantics=("parallel", "arbitrary"),
            vmem_limit_bytes=budget),
        cost_estimate=pl.CostEstimate(
            flops=3 * N * C, transcendentals=0,
            bytes_accessed=N * C * x_itemsize + 2 * p_split * C * 4),
    )(x)
    x_sum = jnp.sum(part_sum, axis=0)    # (1, C) f32
    x_ssq = jnp.sum(part_ssq, axis=0)

    # ---- Fold BN into (scale, b_fold); W stays untouched (scale applied in-kernel). ----
    inv_n = 1.0 / N
    mean = x_sum * inv_n
    var = jnp.maximum(x_ssq * inv_n - mean * mean, 0.0)   # biased variance (BatchNorm)
    # TODO(synk): for very large N / large-mean data, switch to a centered (two-pass)
    # variance to avoid E[x^2]-mean^2 cancellation drift vs PyTorch.
    inv_std = lax.rsqrt(var + BN_EPS)
    scale = gamma * inv_std                               # (1, C) f32
    b_fold = (beta - mean * scale) @ w + b                # (1, S) f32

    w_mm = w
    if s_pad != S:
        w_mm = jnp.pad(w_mm, ((0, 0), (0, s_pad - S)))
        b_fold = jnp.pad(b_fold, ((0, 0), (0, s_pad - S)))
    if w_mm.dtype != mm_dtype:
        w_mm = w_mm.astype(mm_dtype)
    # TODO(synk): W no longer depends on batch stats -> pre-pad / pre-cast it once at
    # init (and reuse across calls) to remove even this small per-call XLA pass.

    # ---- Pass 2: tiled (x * scale) @ W + b_fold, ReLU ----
    out = pl.pallas_call(
        _mlp_kernel,
        out_shape=jax.ShapeDtypeStruct((N, s_pad), emb.dtype),
        grid=(grid_n,),
        in_specs=[
            pl.BlockSpec((tile_n, C), lambda i: (i, 0)),
            pl.BlockSpec((1, C), lambda i: (0, 0)),
            pl.BlockSpec((C, s_pad), lambda i: (0, 0)),
            pl.BlockSpec((1, s_pad), lambda i: (0, 0)),
        ],
        out_specs=pl.BlockSpec((tile_n, s_pad), lambda i: (i, 0)),
        compiler_params=pltpu.CompilerParams(
            dimension_semantics=("parallel",),   # megacore-shardable row grid
            vmem_limit_bytes=budget),
        cost_estimate=pl.CostEstimate(
            flops=2 * N * C * s_pad, transcendentals=0,
            bytes_accessed=(N * C * x_itemsize + C * s_pad * x_itemsize
                            + (C + s_pad) * 4 + N * s_pad * out_itemsize)),
    )(x, scale, w_mm, b_fold)
    # TODO(synk): for very wide S or very large C, add S / K grid axes with a VMEM
    # accumulator (standard tiled-matmul) to bound the per-step working set on v7x,
    # and single-buffer the constant-index W/bias/scale operands.

    if s_pad != S:
        out = out[:, :S]
    return out.reshape(B, L, S) if was_3d else out


def init_params(key, fused_embedding_dim, state_dim):
    """Deterministic synthetic parameters (shapes match the nn.Module __init__)."""
    k_w, k_b, k_g, k_be = jax.random.split(key, 4)
    bound = 1.0 / float(fused_embedding_dim) ** 0.5
    # nn.Linear(fused_embedding_dim, state_dim): weight (S, C) -> stored transposed (C, S)
    lin_w = jax.random.uniform(k_w, (state_dim, fused_embedding_dim),
                               jnp.float32, -bound, bound)
    lin_b = jax.random.uniform(k_b, (1, state_dim), jnp.float32, -bound, bound)
    return {
        "bn_weight": jax.random.uniform(k_g, (1, fused_embedding_dim), jnp.float32, 0.5, 1.5),
        "bn_bias": jax.random.normal(k_be, (1, fused_embedding_dim), jnp.float32) * 0.1,
        "lin_weight_t": jnp.transpose(lin_w),
        "lin_bias": lin_b,
    }


def _reference(emb, params):
    """Pure-JAX reference of the same forward (training-mode BN batch statistics)."""
    shape = emb.shape
    C = shape[-1]
    x = emb.reshape(-1, C).astype(jnp.float32)
    mean = jnp.mean(x, axis=0, keepdims=True)
    var = jnp.mean((x - mean) ** 2, axis=0, keepdims=True)
    xn = (x - mean) / jnp.sqrt(var + BN_EPS)
    xn = xn * params["bn_weight"] + params["bn_bias"]
    y = xn @ params["lin_weight_t"] + params["lin_bias"]
    y = jnp.maximum(y, 0.0)
    return y.reshape(*shape[:-1], y.shape[-1])


if __name__ == "__main__":
    key = jax.random.PRNGKey(0)

    def run_case(idx, B, L, C, S, dtype, atol, rtol):
        k_emb, k_params = jax.random.split(jax.random.fold_in(key, idx))
        emb = (jax.random.normal(k_emb, (B, L, C), jnp.float32) * 2.0 + 0.5).astype(dtype)
        prop = jnp.zeros((B, L, 8), jnp.float32)   # unused by the forward
        params = init_params(k_params, C, S)
        fwd = jax.jit(functools.partial(emb_model_forward, params=params))
        out = jax.block_until_ready(fwd(emb, prop))
        ref = _reference(emb.astype(jnp.float32), params)
        assert out.shape == (B, L, S), (out.shape, (B, L, S))
        assert out.dtype == dtype, out.dtype
        err = float(jnp.max(jnp.abs(out.astype(jnp.float32) - ref)))
        assert jnp.allclose(out.astype(jnp.float32), ref, atol=atol, rtol=rtol), (idx, err)

    # Small (driver-sized) shapes -> single fused kernel path, f32 and bf16.
    run_case(0, 2, 8, 32, 16, jnp.float32, 2e-4, 2e-4)
    run_case(1, 2, 8, 32, 16, jnp.bfloat16, 8e-2, 8e-2)
    # Larger shapes -> two-pass path: 2-way parallel stats, tail-row masking, true-S output.
    run_case(2, 2, 4596, 64, 48, jnp.float32, 5e-4, 1e-3)
    run_case(3, 2, 4596, 64, 48, jnp.bfloat16, 1e-1, 1e-1)
    # Misaligned wider head -> lane-padded (128) output + slice branch.
    run_case(4, 1, 9000, 32, 96, jnp.float32, 5e-4, 1e-3)

    print("KERNEL_OK")
</pallas_src>

<mosaic_0001>
module attributes {stable_mosaic.version = 11 : i64} {
  func.func @_fused_kernel(%arg0: memref<16x32xf32, #tpu.memory_space<vmem>>, %arg1: memref<1x32xf32, #tpu.memory_space<vmem>>, %arg2: memref<1x32xf32, #tpu.memory_space<vmem>>, %arg3: memref<32x16xf32, #tpu.memory_space<vmem>>, %arg4: memref<1x16xf32, #tpu.memory_space<vmem>>, %arg5: memref<16x16xf32, #tpu.memory_space<vmem>>) attributes {dimension_semantics = [], scalar_prefetch = 0 : i64, scratch_operands = 0 : i64, tpu.core_type = #tpu.core_type<tc>} {
    %c0 = arith.constant 0 : index
    %c0_0 = arith.constant 0 : index
    %0 = vector.load %arg0[%c0, %c0_0] : memref<16x32xf32, #tpu.memory_space<vmem>>, vector<16x32xf32>
    %cst = arith.constant dense<0.000000e+00> : vector<32xf32>
    %1 = vector.multi_reduction <add>, %0, %cst [0] : vector<16x32xf32> to vector<32xf32>
    %2 = vector.shape_cast %1 : vector<32xf32> to vector<1x32xf32>
    %cst_1 = arith.constant 6.250000e-02 : f32
    %3 = vector.broadcast %cst_1 : f32 to vector<1x32xf32>
    %4 = arith.mulf %2, %3 : vector<1x32xf32>
    %5 = arith.mulf %0, %0 : vector<16x32xf32>
    %cst_2 = arith.constant dense<0.000000e+00> : vector<32xf32>
    %6 = vector.multi_reduction <add>, %5, %cst_2 [0] : vector<16x32xf32> to vector<32xf32>
    %7 = vector.shape_cast %6 : vector<32xf32> to vector<1x32xf32>
    %cst_3 = arith.constant 6.250000e-02 : f32
    %8 = vector.broadcast %cst_3 : f32 to vector<1x32xf32>
    %9 = arith.mulf %7, %8 : vector<1x32xf32>
    %10 = arith.mulf %4, %4 : vector<1x32xf32>
    %11 = arith.subf %9, %10 : vector<1x32xf32>
    %cst_4 = arith.constant 0.000000e+00 : f32
    %12 = vector.broadcast %cst_4 : f32 to vector<1x32xf32>
    %13 = arith.maximumf %11, %12 : vector<1x32xf32>
    %cst_5 = arith.constant 9.99999974E-6 : f32
    %14 = vector.broadcast %cst_5 : f32 to vector<1x32xf32>
    %15 = arith.addf %13, %14 : vector<1x32xf32>
    %16 = math.rsqrt %15 : vector<1x32xf32>
    %c0_6 = arith.constant 0 : index
    %c0_7 = arith.constant 0 : index
    %17 = vector.load %arg1[%c0_6, %c0_7] : memref<1x32xf32, #tpu.memory_space<vmem>>, vector<1x32xf32>
    %18 = arith.mulf %17, %16 : vector<1x32xf32>
    %c0_8 = arith.constant 0 : index
    %c0_9 = arith.constant 0 : index
    %19 = vector.load %arg2[%c0_8, %c0_9] : memref<1x32xf32, #tpu.memory_space<vmem>>, vector<1x32xf32>
    %20 = arith.mulf %4, %18 : vector<1x32xf32>
    %21 = arith.subf %19, %20 : vector<1x32xf32>
    %22 = vector.broadcast %18 : vector<1x32xf32> to vector<16x32xf32>
    %23 = arith.mulf %0, %22 : vector<16x32xf32>
    %24 = vector.broadcast %21 : vector<1x32xf32> to vector<16x32xf32>
    %25 = arith.addf %23, %24 : vector<16x32xf32>
    %c0_10 = arith.constant 0 : index
    %c0_11 = arith.constant 0 : index
    %26 = vector.load %arg3[%c0_10, %c0_11] : memref<32x16xf32, #tpu.memory_space<vmem>>, vector<32x16xf32>
    %cst_12 = arith.constant dense<0.000000e+00> : vector<16x16xf32>
    %27 = tpu.matmul %25, %26, %cst_12 {dimension_numbers = #tpu.dot_dimension_numbers<[1], [0], [0], [1], [0, 0, 1, 1], [], []>} : vector<16x32xf32>, vector<32x16xf32>, vector<16x16xf32> -> vector<16x16xf32>
    %c0_13 = arith.constant 0 : index
    %c0_14 = arith.constant 0 : index
    %28 = vector.load %arg4[%c0_13, %c0_14] : memref<1x16xf32, #tpu.memory_space<vmem>>, vector<1x16xf32>
    %29 = vector.broadcast %28 : vector<1x16xf32> to vector<16x16xf32>
    %30 = arith.addf %27, %29 : vector<16x16xf32>
    %cst_15 = arith.constant 0.000000e+00 : f32
    %31 = vector.broadcast %cst_15 : f32 to vector<16x16xf32>
    %32 = arith.maximumf %30, %31 : vector<16x16xf32>
    %c0_16 = arith.constant 0 : index
    %c0_17 = arith.constant 0 : index
    %33 = vector.load %arg5[%c0_16, %c0_17] : memref<16x16xf32, #tpu.memory_space<vmem>>, vector<16x16xf32>
    tpu.vector_store %arg5[%c0_16, %c0_17], %32 {strides = array<i32>} : memref<16x16xf32, #tpu.memory_space<vmem>>, vector<16x16xf32>,
    return
  }
}

</mosaic_0001>

<bundles_post_ra>
// kernel: emb_model_forward.1
= control target key start
LH: loop header
LB: loop body
LE: loop exit
PB: predicated region body
PF: predicated region fallthrough
CT: control target
= control target key end

     0   :  { %10 = vsyncpa [#allocation3], 0  ;;  %s417_s0 = inlined_call_operand.hbm [shape: f32[16,32], index: 0, kind: input, shape index: {}]   ;;  %s418_s1 = inlined_call_operand.vmem [shape: f32[1,32], index: 1, kind: input, shape index: {}]   ;;  %s419_s2 = inlined_call_operand.vmem [shape: f32[1,32], index: 2, kind: input, shape index: {}]   ;;  %s420_s3 = inlined_call_operand.hbm [shape: f32[32,16], index: 3, kind: input, shape index: {}]   ;;  %s421_s4 = inlined_call_operand.vmem [shape: f32[1,16], index: 4, kind: input, shape index: {}]   ;;  %s422_s5 = inlined_call_operand.hbm [shape: f32[16,16], index: 5, kind: output, shape index: {}]  }
   0x1   :  { %11 = vsyncpa [#allocation6], 0 }
   0x2   :  { %12 = vsyncpa [#allocation4], 0  ;;  %s322_s18 = smov [#allocation2]   ;;  %s250_s22 = scalar_lea.hbm %s417_s0, 256 }
   0x3   :  { %s18_s19 = sshll.u32 %s322_s18, 4  ;;  %p251_p0 = scmp.ne.s32.totalorder %s417_s0, %s250_s22  ;;  %s19_s19 = int_to_ptr.vmem [resolvable:$true] %s18_s19 }
   0x4   :  { %p254_p1 = scmp.lt.u32.totalorder %s250_s22, %s417_s0 }
   0x6   :  { %p256_p2 = pnand %p254_p1, %p251_p0 }
   0x8   :  { %259 = shalt.err (!%p256_p2)
}
   0x9   :  { %s260_s27 = scalar_lea.vmem %s19_s19, 256  ;;  %p265_p4 = scmp.lt.s32.totalorder %s19_s19, %s19_s19 }
   0xa   :  { %p261_p3 = scmp.ne.s32.totalorder %s19_s19, %s260_s27  ;;  %p266_p5 = scmp.lt.s32.totalorder %s260_s27, %s260_s27 }
   0xc   :  { %p267_p6 = por %p266_p5, %p265_p4 }
   0xe   :  { %p268_p7 = pnand %p267_p6, %p261_p3 }
  0x10   :  { %271 = shalt.err (!%p268_p7)
}
  0x11   :  { %s323_s28 = smov 128   ;;  %s324_s29 = smov 8  }
  0x12   :  { %24 = dma.hbm_to_vmem [thread:$0]  %s417_s0, 256, %s19_s19, [#allocation3], %s323_s28, %s323_s28, %s324_s29  }
  0x13   :  { %s325_s7 = smov [#allocation5]   ;;  %s272_s11 = scalar_lea.hbm %s420_s3, 512 }
  0x14   :  { %s34_s8 = sshll.u32 %s325_s7, 4  ;;  %p273_p8 = scmp.ne.s32.totalorder %s420_s3, %s272_s11  ;;  %s35_s8 = int_to_ptr.vmem [resolvable:$true] %s34_s8 }
  0x15   :  { %p276_p9 = scmp.lt.u32.totalorder %s272_s11, %s420_s3 }
  0x17   :  { %p278_p10 = pnand %p276_p9, %p273_p8 }
  0x19   :  { %281 = shalt.err (!%p278_p10)
}
  0x1a   :  { %s282_s16 = scalar_lea.vmem %s35_s8, 512  ;;  %p287_p12 = scmp.lt.s32.totalorder %s35_s8, %s35_s8 }
  0x1b   :  { %p283_p11 = scmp.ne.s32.totalorder %s35_s8, %s282_s16  ;;  %p288_p13 = scmp.lt.s32.totalorder %s282_s16, %s282_s16 }
  0x1d   :  { %p289_p0 = por %p288_p13, %p287_p12 }
  0x1f   :  { %p290_p1 = pnand %p289_p0, %p283_p11 }
  0x21   :  { %293 = shalt.err (!%p290_p1)
}
  0x22   :  { %40 = dma.hbm_to_vmem [thread:$0]  %s420_s3, 512, %s35_s8, [#allocation6], %s323_s28, %s323_s28, %s324_s29  }
  0x23   :  { %316 = dma.done.wait [#allocation3], 256  }
  0x24   :  { %317 = vsyncadd [#allocation3], 4294967040 }
  0x25   :  { %318 = dma.done.wait [#allocation6], 512  }
  0x26   :  { %319 = vsyncadd [#allocation6], 4294966784  ;;  %vm51_vm0 = vcmask 261120   ;;  %v100_v0 = vld [vmem:[#allocation5] sm:$0xff]  ;;  %v101_v1 = vld [vmem:[#allocation5 + $0x8] sm:$0xff]  ;;  %v85_v34 = vlaneseq  ;;  %vm194_vm1 = vcmask 130048  }
  0x27   :  { %v102_v2 = vld [vmem:[#allocation5 + $0x10] sm:$0xff]  ;;  %v235_v3 = vpack.c.bf16 %v101_v1, %v100_v0  ;;  %v103_v4 = vld [vmem:[#allocation5 + $0x18] sm:$0xff] }
  0x28   :  { %v49_v5 = vld [vmem:[#allocation2] sm:$0xff]  ;;  %v50_v6 = vld [vmem:[#allocation2 + $0x8] sm:$0xff]  ;;  %v239_v7 = vpack.c.bf16 %v103_v4, %v102_v2  ;;  %v86_v35 = vshrl.u32 %v85_v34, 7 }
  0x29   :  { %v52_v8 = vsel %vm51_vm0, %v49_v5, 0.0  ;;  %v53_v9 = vsel %vm51_vm0, %v50_v6, 0.0  ;;  %v62_v10 = vmul.f32 %v49_v5, %v49_v5  ;;  %236 = vmatprep.subr.bf16.mxu0 %v235_v3  ;;  %v63_v12 = vmul.f32 %v50_v6, %v50_v6  ;;  %v79_v36 = vld [vmem:[%s418_s1] sm:$0x1] }
  0x2a   :  { %v54_v11 = vadd.f32 %v53_v9, %v52_v8  ;;  %238 = vmatpush3.bf16.msra.mxu0 %v235_v3  ;;  %v87_v37 = vsub.s32 0, %v86_v35  ;;  %v81_v40 = vld [vmem:[%s419_s2] sm:$0x1]  ;;  %s326_s2 = smov [#allocation7]  }
  0x2b   :  { %v64_v13 = vsel %vm51_vm0, %v62_v10, 0.0  ;;  %240 = vmatprep.subr.bf16.mxu0 %v239_v7  ;;  %v65_v15 = vsel %vm51_vm0, %v63_v12, 0.0  ;;  %v215_v49 = vld [vmem:[%s421_s4] ss:$0 sm:$0xff]  ;;  %s202_s22 = sshll.u32 %s326_s2, 4  ;;  %s203_s22 = int_to_ptr.vmem [resolvable:$true] %s202_s22 }
  0x2c   :  { %v55_v14 = vrot.slane %v54_v11, 4  ;;  %v66_v16 = vadd.f32 %v65_v15, %v64_v13  ;;  %s294_s23 = scalar_lea.vmem %s203_s22, 256  ;;  %p299_p3 = scmp.lt.s32.totalorder %s203_s22, %s203_s22 }
  0x2d   :  { %p295_p2 = scmp.ne.s32.totalorder %s203_s22, %s294_s23  ;;  %p300_p4 = scmp.lt.s32.totalorder %s294_s23, %s294_s23 }
  0x2e   :  { %v56_v17 = vadd.f32 %v55_v14, %v54_v11  ;;  %242 = vmatpush3.bf16.msra.mxu0 %v239_v7  ;;  %v67_v18 = vrot.slane %v66_v16, 4 }
  0x2f   :  { %p301_p5 = por %p300_p4, %p299_p3 }
  0x30   :  { %v57_v19 = vrot.slane %v56_v17, 2  ;;  %v68_v20 = vadd.f32 %v67_v18, %v66_v16 }
  0x31   :  { %p302_p6 = pnand %p301_p5, %p295_p2 }
  0x32   :  { %v58_v21 = vadd.f32 %v57_v19, %v56_v17  ;;  %v69_v22 = vrot.slane %v68_v20, 2 }
  0x34   :  { %v59_v23 = vrot.slane %v58_v21, 1  ;;  %v70_v24 = vadd.f32 %v69_v22, %v68_v20 }
  0x36   :  { %v60_v25 = vadd.f32 %v59_v23, %v58_v21  ;;  %v71_v26 = vrot.slane %v70_v24, 1 }
  0x38   :  { %v61_v27 = vmul.f32 0.0625, %v60_v25  ;;  %v72_v28 = vadd.f32 %v71_v26, %v70_v24 }
  0x3a   :  { %v74_v29 = vmul.f32 %v61_v27, %v61_v27  ;;  %v73_v30 = vmul.f32 0.0625, %v72_v28 }
  0x3c   :  { %v75_v31 = vsub.f32 %v73_v30, %v74_v29 }
  0x3e   :  { %v76_v32 = vmax.f32 %v75_v31, 0.0 }
  0x40   :  { %v77_v33 = vadd.f32 1e-05, %v76_v32 }
  0x42   :  { %248 = vrsqrt.f32 %v77_v33 }
  0x4c   :  { %v249_v38 = vpop.eup %248 }
  0x4d   :  { %v80_v39 = vmul.f32 %v249_v38, %v79_v36 }
  0x4f   :  { %v82_v41 = vmul.f32 %v80_v39, %v61_v27  ;;  %v88_v42 = vrot.slane %v80_v39, %v87_v37 }
  0x51   :  { %v83_v43 = vsub.f32 %v81_v40, %v82_v41  ;;  %v90_v44 = vmul.f32 %v88_v42, %v49_v5  ;;  %v91_v45 = vmul.f32 %v88_v42, %v50_v6 }
  0x53   :  { %v96_v46 = vrot.slane %v83_v43, %v87_v37 }
  0x55   :  { %v98_v47 = vadd.f32 %v96_v46, %v90_v44  ;;  %v99_v48 = vadd.f32 %v96_v46, %v91_v45 }
  0x57   :  { %232 = vmatprep.mubr.msk.f32.mxu0 %vm51_vm0, %v98_v47 }
  0x58   :  { %233 = vmatmul.mubr.msk.f32.vlgmr.msra.gmra.mrb[0].mxu0 %vm51_vm0, %v99_v48 }
 0x12b   :  { %v234_v50 = vpop.f32.mrb[0].mxu0 }
 0x12c   :  { %v189_v51 = vadd.f32 %v234_v50, %v215_v49  ;;  %v183_v52 = vpop.f32.mrb[1].mxu0 }
 0x12d   :  { %v184_v53 = vadd.f32 %v215_v49, %v183_v52 }
 0x12e   :  { %v193_v54 = vmax.f32 %v189_v51, 0.0 }
 0x12f   :  { %v192_v55 = vmax.f32 %v184_v53, 0.0 }
 0x130   :  { %196 = vst.msk [vmem:[#allocation7 + $0x8] sm:$0xff] %vm194_vm1, %v193_v54 }
 0x131   :  { %195 = vst.msk [vmem:[#allocation7] sm:$0xff] %vm194_vm1, %v192_v55 }
 0x132   :  { %305 = shalt.err (!%p302_p6)
}
 0x133   :  { %s306_s25 = scalar_lea.hbm %s422_s5, 256 }
 0x134   :  { %p307_p7 = scmp.ne.s32.totalorder %s422_s5, %s306_s25  ;;  %p310_p8 = scmp.lt.u32.totalorder %s306_s25, %s422_s5 }
 0x136   :  { %p312_p9 = pnand %p310_p8, %p307_p7 }
 0x138   :  { %315 = shalt.err (!%p312_p9)
}
 0x139   :  { %208 = dma.vmem_to_hbm [thread:$0]  %s203_s22, 256, %s422_s5, [#allocation4], %s323_s28, %s323_s28, %s324_s29  }
 0x13a   :  { %320 = dma.done.wait [#allocation4], 256  }
 0x13b   :  { %321 = vsyncadd [#allocation4], 4294967040 }
 0x13c   :  { %212 = vsyncpa [#allocation3], 1 }
 0x13d   :  { %213 = vsyncpa [#allocation6], 1 }
 0x13e   :  { %214 = vsyncpa [#allocation4], 1 }

</bundles_post_ra>
